<compile_context>
chip_gen: v5e
topology: v5e:2x2
jax: 0.10.0
libtpu: 0.0.40
codegen_flags: <defaults>
</compile_context>

<pallas_src>
import jax
import jax.numpy as jnp
from jax import lax
from jax.experimental import pallas as pl
from jax.experimental.pallas import tpu as pltpu


def _round_up(x, m):
    return (x + m - 1) // m * m


def _pick_tile(dim_padded, max_tile):
    """Largest multiple-of-128 divisor of dim_padded that is <= max_tile."""
    t = min(max_tile, dim_padded)
    t -= t % 128
    while t > 128 and dim_padded % t != 0:
        t -= 128
    return max(t, 128)


def qkv_proj_kernel(x_ref, w_ref, b_ref, o_ref, acc_ref):
    # x_ref: (tm, tk) bf16    w_ref: (tn, tk) bf16 (nn.Linear layout, out x in)
    # b_ref: (1, tn) f32      o_ref: (tm, tn)      acc_ref: (tm, tn) f32
    k = pl.program_id(3)

    @pl.when(k == 0)
    def _init():
        acc_ref[...] = jnp.zeros_like(acc_ref)

    # Contract x dim 1 with w dim 1 (trans_b) -> (tm, tn), f32 accumulate on MXU.
    acc_ref[...] += lax.dot_general(
        x_ref[...], w_ref[...],
        dimension_numbers=(((1,), (1,)), ((), ())),
        preferred_element_type=jnp.float32,
    )

    @pl.when(k == pl.num_programs(3) - 1)
    def _finalize():
        o_ref[...] = (acc_ref[...] + b_ref[...].astype(jnp.float32)).astype(o_ref.dtype)


def self_attention_v2_forward(x, weight, bias):
    """x: (B, S, H); weight: (3H, H) [nn.Linear layout]; bias: (3H,).

    Returns (Q, K, V), each (B, S, H) in x.dtype.
    """
    B, S, H = x.shape
    M = B * S
    out_dtype = x.dtype

    # ---- tile sizes (sized for the smallest scoped-VMEM budget, v7x-safe) ----
    if M <= 256:
        Mp = _round_up(M, 8)       # minimal row padding for small batch*seq
        tm = Mp
    else:
        tm = 256
        Mp = _round_up(M, tm)
    Hn = _round_up(H, 128)          # per-head output width (lane axis)
    Hk = _round_up(H, 128)          # contraction dim
    tn = _pick_tile(Hn, 512)
    tk = _pick_tile(Hk, 1024)       # 728 -> 768: single K step, no re-fetch

    # ---- prepare operands: bf16 MXU inputs, no transposed weight copy ----
    x2d = x.reshape(M, H).astype(jnp.bfloat16)
    w3 = weight.reshape(3, H, H).astype(jnp.bfloat16)   # pure reshape of (3H, H)
    b3 = bias.reshape(3, 1, H).astype(jnp.float32)

    if Mp != M or Hk != H:
        x2d = jnp.pad(x2d, ((0, Mp - M), (0, Hk - H)))
    if Hn != H or Hk != H:
        w3 = jnp.pad(w3, ((0, 0), (0, Hn - H), (0, Hk - H)))
    if Hn != H:
        b3 = jnp.pad(b3, ((0, 0), (0, 0), (0, Hn - H)))

    grid = (3, Mp // tm, Hn // tn, Hk // tk)   # (head, M-tiles, N-tiles, K-tiles)

    out_itemsize = jnp.dtype(out_dtype).itemsize
    cost = pl.CostEstimate(
        flops=2 * M * (3 * H) * H,
        transcendentals=0,
        bytes_accessed=(Mp * Hk * 2 + 3 * Hn * Hk * 2 + 3 * Hn * 4
                        + 3 * Mp * Hn * out_itemsize),
    )

    out = pl.pallas_call(
        qkv_proj_kernel,
        out_shape=jax.ShapeDtypeStruct((3, Mp, Hn), out_dtype),
        grid_spec=pltpu.PrefetchScalarGridSpec(
            num_scalar_prefetch=0,
            grid=grid,
            in_specs=[
                # x: depends on (m, k) only
                pl.BlockSpec((tm, tk), lambda p, i, j, k: (i, k)),
                # weight: depends on (head, n, k) only -> reused across M tiles
                pl.BlockSpec((None, tn, tk), lambda p, i, j, k: (p, j, k)),
                # bias: tracks (head, n)
                pl.BlockSpec((None, 1, tn), lambda p, i, j, k: (p, 0, j)),
            ],
            out_specs=pl.BlockSpec((None, tm, tn), lambda p, i, j, k: (p, i, j)),
            scratch_shapes=[pltpu.VMEM((tm, tn), jnp.float32)],
        ),
        compiler_params=pltpu.CompilerParams(
            dimension_semantics=("parallel", "parallel", "parallel", "arbitrary"),
            vmem_limit_bytes=32 * 1024 * 1024,
        ),
        cost_estimate=cost,
    )(x2d, w3, b3)

    out = out[:, :M, :H].reshape(3, B, S, H)
    return out[0], out[1], out[2]


if __name__ == "__main__":
    key = jax.random.PRNGKey(0)
    kx, kw, kb = jax.random.split(key, 3)

    B, S, H = 2, 8, 32  # small shapes consistent with the module (hidden_dim=H)

    x = jax.random.normal(kx, (B, S, H), dtype=jnp.float32)
    # nn.Linear(hidden, 3*hidden): weight (3H, H), bias (3H,)
    weight = jax.random.normal(kw, (3 * H, H), dtype=jnp.float32) * (1.0 / jnp.sqrt(H))
    bias = jax.random.normal(kb, (3 * H,), dtype=jnp.float32) * 0.01

    Q, K, V = self_attention_v2_forward(x, weight, bias)
    jax.block_until_ready((Q, K, V))

    # correctness check against plain-JAX f32 reference (bf16 MXU inputs -> loose tol)
    ref = x @ weight.T + bias
    Qr, Kr, Vr = ref[..., :H], ref[..., H:2 * H], ref[..., 2 * H:]
    assert Q.shape == (B, S, H) and K.shape == (B, S, H) and V.shape == (B, S, H)
    assert jnp.allclose(Q, Qr, atol=5e-2, rtol=5e-2)
    assert jnp.allclose(K, Kr, atol=5e-2, rtol=5e-2)
    assert jnp.allclose(V, Vr, atol=5e-2, rtol=5e-2)

    print("KERNEL_OK")
</pallas_src>

<mosaic_0001>
module attributes {stable_mosaic.version = 11 : i64} {
  func.func @qkv_proj_kernel(%arg0: i32, %arg1: i32, %arg2: i32, %arg3: i32, %arg4: memref<16x128xbf16, #tpu.memory_space<vmem>>, %arg5: memref<1x128x128xbf16, #tpu.memory_space<vmem>>, %arg6: memref<1x1x128xf32, #tpu.memory_space<vmem>>, %arg7: memref<1x16x128xf32, #tpu.memory_space<vmem>>, %arg8: memref<16x128xf32, #tpu.memory_space<vmem>>) attributes {dimension_semantics = [#tpu.dimension_semantics<parallel>, #tpu.dimension_semantics<parallel>, #tpu.dimension_semantics<parallel>, #tpu.dimension_semantics<arbitrary>], iteration_bounds = array<i64: 3, 1, 1, 1>, scalar_prefetch = 0 : i64, scratch_operands = 1 : i64, tpu.core_type = #tpu.core_type<tc>, window_params = [{transform_indices = @transform_0, window_bounds = array<i64: 16, 128>}, {transform_indices = @transform_1, window_bounds = array<i64: 1, 128, 128>}, {transform_indices = @transform_2, window_bounds = array<i64: 1, 1, 128>}, {transform_indices = @transform_3, window_bounds = array<i64: 1, 16, 128>}]} {
    %c0_i32 = arith.constant 0 : i32
    %0 = arith.cmpi eq, %arg3, %c0_i32 : i32
    %1 = arith.extui %0 : i1 to i32
    %c0_i32_0 = arith.constant 0 : i32
    %2 = arith.cmpi ne, %1, %c0_i32_0 : i32
    scf.if %2 {
      %cst_11 = arith.constant 0.000000e+00 : f32
      %13 = vector.broadcast %cst_11 : f32 to vector<16x128xf32>
      %c0_12 = arith.constant 0 : index
      %c0_13 = arith.constant 0 : index
      %14 = vector.load %arg8[%c0_12, %c0_13] : memref<16x128xf32, #tpu.memory_space<vmem>>, vector<16x128xf32>
      tpu.vector_store %arg8[%c0_12, %c0_13], %13 {strides = array<i32>} : memref<16x128xf32, #tpu.memory_space<vmem>>, vector<16x128xf32>,
    } else {
    }
    %c0 = arith.constant 0 : index
    %c0_1 = arith.constant 0 : index
    %3 = vector.load %arg8[%c0, %c0_1] : memref<16x128xf32, #tpu.memory_space<vmem>>, vector<16x128xf32>
    %c0_2 = arith.constant 0 : index
    %c0_3 = arith.constant 0 : index
    %4 = vector.load %arg4[%c0_2, %c0_3] : memref<16x128xbf16, #tpu.memory_space<vmem>>, vector<16x128xbf16>
    %c0_4 = arith.constant 0 : index
    %c0_5 = arith.constant 0 : index
    %c0_6 = arith.constant 0 : index
    %5 = vector.load %arg5[%c0_4, %c0_5, %c0_6] : memref<1x128x128xbf16, #tpu.memory_space<vmem>>, vector<1x128x128xbf16>
    %6 = vector.shape_cast %5 : vector<1x128x128xbf16> to vector<128x128xbf16>
    %cst = arith.constant dense<0.000000e+00> : vector<16x128xf32>
    %7 = tpu.matmul %4, %6, %cst {dimension_numbers = #tpu.dot_dimension_numbers<[1], [1], [0], [0], [0, 0, 1, 0], [], []>} : vector<16x128xbf16>, vector<128x128xbf16>, vector<16x128xf32> -> vector<16x128xf32>
    %8 = arith.addf %3, %7 : vector<16x128xf32>
    %c0_7 = arith.constant 0 : index
    %c0_8 = arith.constant 0 : index
    %9 = vector.load %arg8[%c0_7, %c0_8] : memref<16x128xf32, #tpu.memory_space<vmem>>, vector<16x128xf32>
    tpu.vector_store %arg8[%c0_7, %c0_8], %8 {strides = array<i32>} : memref<16x128xf32, #tpu.memory_space<vmem>>, vector<16x128xf32>,
    %c0_i32_9 = arith.constant 0 : i32
    %10 = arith.cmpi eq, %arg3, %c0_i32_9 : i32
    %11 = arith.extui %10 : i1 to i32
    %c0_i32_10 = arith.constant 0 : i32
    %12 = arith.cmpi ne, %11, %c0_i32_10 : i32
    scf.if %12 {
      %c0_11 = arith.constant 0 : index
      %c0_12 = arith.constant 0 : index
      %13 = vector.load %arg8[%c0_11, %c0_12] : memref<16x128xf32, #tpu.memory_space<vmem>>, vector<16x128xf32>
      %c0_13 = arith.constant 0 : index
      %c0_14 = arith.constant 0 : index
      %c0_15 = arith.constant 0 : index
      %14 = vector.load %arg6[%c0_13, %c0_14, %c0_15] : memref<1x1x128xf32, #tpu.memory_space<vmem>>, vector<1x1x128xf32>
      %15 = vector.shape_cast %14 : vector<1x1x128xf32> to vector<1x128xf32>
      %16 = vector.broadcast %15 : vector<1x128xf32> to vector<16x128xf32>
      %17 = arith.addf %13, %16 : vector<16x128xf32>
      %c0_16 = arith.constant 0 : index
      %c0_17 = arith.constant 0 : index
      %c0_18 = arith.constant 0 : index
      %18 = vector.load %arg7[%c0_16, %c0_17, %c0_18] : memref<1x16x128xf32, #tpu.memory_space<vmem>>, vector<1x16x128xf32>
      %19 = vector.shape_cast %18 : vector<1x16x128xf32> to vector<16x128xf32>
      %20 = vector.shape_cast %17 : vector<16x128xf32> to vector<1x16x128xf32>
      tpu.vector_store %arg7[%c0_16, %c0_17, %c0_18], %20 {strides = array<i32>} : memref<1x16x128xf32, #tpu.memory_space<vmem>>, vector<1x16x128xf32>,
    } else {
    }
    return
  }
  func.func @transform_0(%arg0: i32, %arg1: i32, %arg2: i32, %arg3: i32) -> (i32, i32) {
    %c0_i32 = arith.constant 0 : i32
    return %arg1, %arg3 : i32, i32
  }
  func.func @transform_1(%arg0: i32, %arg1: i32, %arg2: i32, %arg3: i32) -> (i32, i32, i32) {
    %c0_i32 = arith.constant 0 : i32
    return %arg0, %arg2, %arg3 : i32, i32, i32
  }
  func.func @transform_2(%arg0: i32, %arg1: i32, %arg2: i32, %arg3: i32) -> (i32, i32, i32) {
    %c0_i32 = arith.constant 0 : i32
    %c0_i32_0 = arith.constant 0 : i32
    return %arg0, %c0_i32, %arg2 : i32, i32, i32
  }
  func.func @transform_3(%arg0: i32, %arg1: i32, %arg2: i32, %arg3: i32) -> (i32, i32, i32) {
    %c0_i32 = arith.constant 0 : i32
    return %arg0, %arg1, %arg2 : i32, i32, i32
  }
}

</mosaic_0001>

<bundles_post_ra>
// kernel: tpu_custom_call.1
= control target key start
LH: loop header
LB: loop body
LE: loop exit
PB: predicated region body
PF: predicated region fallthrough
CT: control target
= control target key end

     0   :  { %8 = vsyncpa [#allocation4], 0  ;;  %s1078_s0 = inlined_call_operand.hbm [shape: bf16[16,128], index: 0, kind: input, shape index: {}]   ;;  %s1079_s1 = inlined_call_operand.hbm [shape: bf16[3,128,128], index: 1, kind: input, shape index: {}]   ;;  %s1080_s2 = inlined_call_operand.hbm [shape: f32[3,1,128], index: 2, kind: input, shape index: {}]   ;;  %s1081_s3 = inlined_call_operand.hbm [shape: f32[3,16,128], index: 3, kind: output, shape index: {}]  }
   0x1   :  { %9 = vsyncpa [#allocation7], 0 }
   0x2   :  { %11 = vsyncpa [#allocation7 + $0x1], 0 }
   0x3   :  { %12 = vsyncpa [#allocation5], 0 }
   0x4   :  { %14 = vsyncpa [#allocation5 + $0x1], 0  ;;  %s902_s12 = smov 0   ;;  %s904_s13 = smov 0  }
   0x5   :  { %s906_s14 = smov 0   ;;  %s908_s15 = smov 0  }
   0x6   :  { %s910_s16 = smov 0   ;;  %s912_s17 = smov 0  }
   0x7 LB: > { %s46_s18 = sadd.s32 1, %s871_s16  ;;  %s85_s19 = sadd.s32 1, %s863_s14  ;;  %s875_s17 = sphi %s912_s17, %s20_s17   ;;  %s871_s16 = sphi %s910_s16, %s1092_s16   ;;  %s867_s15 = sphi %s908_s15, %s1091_s15   ;;  %s863_s14 = sphi %s906_s14, %s1090_s14   ;;  %s859_s13 = sphi %s904_s13, %s1089_s13   ;;  %s855_s12 = sphi %s902_s12, %s1088_s12  }
   0x8   : > { %p48_p0 = scmp.ge.s32.totalorder %s46_s18, 3  ;;  %p92_p1 = scmp.ne.s32.totalorder %s863_s14, %s859_s13 }
   0x9   : > { %p93_p2 = scmp.eq.s32.totalorder %s875_s17, 0  ;;  %p642_p5 = scmp.lt.s32.totalorder %s875_s17, 3 }
   0xa   : > { %s1094_s18 = smov (%p48_p0, %s46_s18), 0  ;;  %s198_s22 = sand.u32 1, %s875_s17  }
   0xb   : > { %p942_p3 = por %p93_p2, %p92_p1  ;;  %s78_s21 = ssub.s32 %s871_s16, %s1094_s18 }
   0xc   : > { %p83_p4 = scmp.eq.s32.totalorder %s78_s21, 0  ;;  %s200_s23 = sand.u32 1, %s863_s14  }
   0xd   : > { %s557_s25 = sshll.u32 %s200_s23, 6  ;;  %s605_s26 = sshll.u32 %s871_s16, 6 }
   0xe   : > { %s952_s24 = scalar_select %p83_p4, %s863_s14, %s85_s19  }
   0xf   : > { %s210_s29 = scalar_lea.hbm %s1079_s1, %s605_s26  ;;  %s202_s30 = scalar_lea.vmem [#allocation6], %s557_s25 }
  0x10   : > { %s213_s4 = sshll.u32 %s202_s30, 4  ;;  %s211_s5 = sshll.u32 %s210_s29, 4  ;;  %s214_s4 = int_to_ptr.vmem [resolvable:$true] %s213_s4  ;;  %s212_s5 = int_to_ptr.hbm [resolvable:$true] %s211_s5 }
  0x11   : > { %p962_p6 = pnand %p642_p5, %p942_p3  ;;  %s966_s7 = scalar_lea.sflag [#allocation7], %s198_s22 }
  0x12   : > { %s877_s8 = smov 64   ;;  %s878_s9 = smov 4  }
  0x13   : > { %633 = dma.hbm_to_vmem [thread:$0]  (!%p962_p6), %s212_s5, 1024, %s214_s4, %s966_s7, %s877_s8, %s877_s8, %s878_s9  }
  0x14   : > { %s975_s10 = sadd.s32 4294967295, %s875_s17   ;;  %s553_s11 = sadd.s32 4294967294, %s875_s17  }
  0x15   : > { %p98_p7 = scmp.ne.s32.totalorder %s859_s13, %s855_s12  ;;  %p99_p8 = scmp.eq.s32.totalorder %s975_s10, 0 }
  0x16   : > { %p154_p9 = scmp.eq.s32.totalorder %s975_s10, 2  ;;  %p160_p10 = scmp.eq.s32.totalorder %s553_s11, 2 }
  0x17   : > { %p554_p11 = scmp.ge.s32.totalorder %s875_s17, 1  ;;  %p985_p12 = por %p99_p8, %p98_p7 }
  0x18   : > { %p992_p13 = por %p154_p9, %p92_p1  ;;  %p996_p0 = por %p160_p10, %p98_p7 }
  0x19   : > { %p167_p2 = scmp.lt.s32.totalorder %s875_s17, 4  ;;  %s182_s26 = sshll.u32 %s1078_s0, 4  ;;  %s183_s26 = int_to_ptr.hbm [resolvable:$true] %s182_s26 }
  0x1a   : > { %s879_s28 = smov [#allocation3]   ;;  %s230_s5 = scalar_lea.hbm %s1080_s2, %s871_s16 }
  0x1b   : > { %p1004_p3 = pnand %p554_p11, %p167_p2  ;;  %s184_s29 = sshll.u32 %s879_s28, 4  ;;  %s185_s29 = int_to_ptr.vmem [resolvable:$true] %s184_s29 }
  0x1c   : > { %s232_s11 = sshll.u32 %s230_s5, 4  ;;  %s226_s22 = scalar_lea.vmem [#allocation8], %s200_s23  ;;  %s233_s11 = int_to_ptr.hbm [resolvable:$true] %s232_s11 }
  0x1d   : > { %p626_p1 = pneg %p1004_p3  ;;  %s234_s25 = sshll.u32 %s226_s22, 4  ;;  %s235_s25 = int_to_ptr.vmem [resolvable:$true] %s234_s25 }
  0x1e   : > { %636 = dma.hbm_to_vmem [thread:$0]  (!%p962_p6), %s233_s11, 16, %s235_s25, %s966_s7  }
  0x1f   : > { %p627_p4 = pnand %p626_p1, %p99_p8  ;;  %243 = sbr.rel (%p1004_p3) target bundleno = 245 (0xf5), region = 32 }
  0x21   : > { %629 = dma.hbm_to_vmem [thread:$0]  (!%p627_p4), %s183_s26, 128, %s185_s29, [#allocation4], %s877_s8, %s877_s8, %s878_s9  }
  0x24   : > { %842 = dma.done.wait (%p99_p8), [#allocation4], 128  }
  0x25   : > { %844 = vsyncadd (%p99_p8), [#allocation4], 4294967168  ;;  %s250_s23 = sand.u32 1, %s975_s10   ;;  %s1032_s28 = sand.u32 1, %s859_s13  }
  0x26   : > { %s562_s30 = sshll.u32 %s1032_s28, 6  ;;  %s251_s8 = scalar_lea.sflag [#allocation7], %s250_s23 }
  0x27   : > { %s254_s6 = scalar_lea.vmem [#allocation6], %s562_s30 }
  0x28   : > { %846 = dma.done.wait (%p985_p12), %s251_s8, 1040  }
  0x29   : > { %848 = vsyncadd (%p985_p12), %s251_s8, 4294966256  ;;  %v614_v0 = vld [vmem:[%s254_s6 + $0x38] sm:$0xff]  ;;  %s263_s7 = scalar_lea.vmem [#allocation8], %s1032_s28  ;;  %v613_v1 = vld [vmem:[%s254_s6 + $0x30] sm:$0xff]  ;;  %s563_s9 = sshll.u32 %s1032_s28, 4 }
  0x2a   : > { %374 = vmatpush.bf16.xpose.msra.mxu0 %v614_v0  ;;  %v612_v2 = vld [vmem:[%s254_s6 + $0x28] sm:$0xff]  ;;  %v611_v3 = vld [vmem:[%s254_s6 + $0x20] sm:$0xff]  ;;  %v610_v4 = vld [vmem:[%s254_s6 + $0x18] sm:$0xff]  ;;  %s615_s10 = sshll.u32 %s867_s15, 4  ;;  %s290_s29 = scalar_lea.vmem [#allocation9], %s563_s9 }
  0x2b   : > { %v609_v5 = vld [vmem:[%s254_s6 + $0x10] sm:$0xff]  ;;  %v608_v6 = vld [vmem:[%s254_s6 + $0x8] sm:$0xff]  ;;  %v607_v7 = vld [vmem:[%s254_s6] sm:$0xff]  ;;  %s420_s27 = scalar_lea.hbm %s1081_s3, %s615_s10  ;;  %s421_s4 = sshll.u32 %s290_s29, 4  ;;  %s422_s4 = int_to_ptr.vmem [resolvable:$true] %s421_s4 }
  0x2c   : > { %v606_v8 = vld [vmem:[#allocation3] sm:$0xff]  ;;  %s423_s5 = sshll.u32 %s420_s27, 4  ;;  %s406_s11 = scalar_lea.sflag [#allocation5], %s1032_s28  ;;  %s424_s5 = int_to_ptr.hbm [resolvable:$true] %s423_s5 }
  0x2d   : > { %v698_v9 = vld [vmem:[%s263_s7] ss:$0 sm:$0xff]  ;;  %s803_s22 = sshra.s32 %s424_s5, 4  ;;  %s809_s30 = scalar_lea.hbm %s1081_s3, 48  ;;  %s804_s22 = int_to_ptr.hbm [resolvable:$true] %s803_s22 }
  0x2e   : > { %s805_s15 = scalar_lea.hbm %s804_s22, 16  ;;  %p810_p8 = scmp.lt.s32.totalorder %s804_s22, %s1081_s3 }
  0x2f   : > { %p806_p5 = scmp.ne.s32.totalorder %s804_s22, %s805_s15  ;;  %p811_p9 = scmp.lt.s32.totalorder %s809_s30, %s805_s15 }
  0x31   : > { %p807_p6 = pnand %p806_p5, %p992_p13  ;;  %p812_p10 = por %p811_p9, %p810_p8 }
  0x32   : > { %375 = vmatpush.bf16.xpose.msra.mxu0 %v613_v1 }
  0x33   : > { %p808_p7 = pneg %p807_p6 }
  0x35   : > { %p813_p11 = pnand %p812_p10, %p808_p7 }
  0x3a   : > { %376 = vmatpush.bf16.xpose.msra.mxu0 %v612_v2 }
  0x42   : > { %377 = vmatpush.bf16.xpose.msra.mxu0 %v611_v3 }
  0x4a   : > { %378 = vmatpush.bf16.xpose.msra.mxu0 %v610_v4 }
  0x52   : > { %379 = vmatpush.bf16.xpose.msra.mxu0 %v609_v5 }
  0x5a   : > { %380 = vmatpush.bf16.xpose.msra.mxu0 %v608_v6 }
  0x62   : > { %381 = vmatpush.bf16.xpose.msra.mxu0 %v607_v7 }
  0x69   : > { %382 = vmatmul.bf16.vlgmr.msra.gmra.mxu0 %v606_v8 }
  0xe6   : > { %v383_v10 = vpop.f32.mrf.mxu0 }
  0xe7   : > { %v401_v11 = vadd.f32 %v698_v9, %v383_v10 }
  0xe9   : > { %403 = vst [vmem:[%s290_s29] sm:$0xff] %v401_v11 }
  0xee   : > { %v385_v12 = vpop.f32.mrf.mxu0 }
  0xef   : > { %v402_v13 = vadd.f32 %v698_v9, %v385_v12 }
  0xf1   : > { %404 = vst [vmem:[%s290_s29 + $0x8] sm:$0xff] %v402_v13 }
  0xf2   : > { %816 = shalt.err (!%p813_p11)
}
  0xf3   : > { %s880_s28 = smov 128   ;;  %s881_s7 = smov 8  }
  0xf4   : > { %624 = dma.vmem_to_hbm [thread:$0]  (%p992_p13), %s422_s4, 256, %s424_s5, %s406_s11, %s880_s28, %s880_s28, %s881_s7  }
  0xf5 PF: > { %p644_p12 = scmp.ge.s32.totalorder %s875_s17, 2  ;;  %s438_s9 = sand.u32 1, %s855_s12  }
  0xf6   : > { %s439_s10 = scalar_lea.sflag [#allocation5], %s438_s9 }
  0xf7   : > { %p638_p2 = pnand %p644_p12, %p996_p0 }
  0xf9   : > { %p639_p3 = pneg %p638_p2 }
  0xfb   : > { %850 = dma.done.wait (%p639_p3), %s439_s10, 256  }
  0xfc   : > { %852 = vsyncadd (%p639_p3), %s439_s10, 4294967040  ;;  %s20_s17 = sadd.s32 1, %s875_s17   ;;  %s1088_s12 = smov %s859_s13 }
  0xfd   : > { %p17_p1 = scmp.ge.s32.totalorder %s20_s17, 5   ;;  %s1089_s13 = smov %s863_s14 }
  0xfe   : > { %s1090_s14 = smov %s952_s24  ;;  %s1091_s15 = smov %s871_s16 }
  0xff   : > { %s1092_s16 = smov %s1094_s18  ;;  %19 = sbr.rel (!%p17_p1) target bundleno = 7 (0x7), region = 102 }
 0x104   :  { %445 = vsyncpa [#allocation4], 1 }
 0x105   :  { %447 = vsyncpa [#allocation4 + $0x1], 1 }
 0x106   :  { %448 = vsyncpa [#allocation7], 1 }
 0x107   :  { %450 = vsyncpa [#allocation7 + $0x1], 1 }
 0x108   :  { %451 = vsyncpa [#allocation5], 1 }
 0x109   :  { %453 = vsyncpa [#allocation5 + $0x1], 1 }

</bundles_post_ra>
